<compile_context>
chip_gen: v5e
topology: v5e:2x2
jax: 0.10.0
libtpu: 0.0.40
codegen_flags: <defaults>
</compile_context>

<pallas_src>
import jax
import jax.numpy as jnp
from jax.experimental import pallas as pl
from jax.experimental.pallas import tpu as pltpu

MXU_DTYPE = jnp.bfloat16  # matmul-operand dtype (f32 accumulation in-kernel)


def _round_up(n, m):
    return (n + m - 1) // m * m


# ----------------------------- Pallas kernel ------------------------------ #
def make_modular_kernel(action_dim):
    """Kernel closed over the (static) number of policy lanes."""

    def kernel(x_ref, w1_ref, b1_ref, w2_ref, b2_ref, wh_ref, bh_ref, out_ref):
        x = x_ref[...]  # bf16 tile

        # network: two Linear + ReLU layers (bf16 MXU operands, f32 accumulation)
        h1 = jnp.dot(x, w1_ref[...], preferred_element_type=jnp.float32) + b1_ref[...]
        h1 = jnp.maximum(h1, 0.0)
        h2 = jnp.dot(h1.astype(w2_ref.dtype), w2_ref[...],
                     preferred_element_type=jnp.float32) + b2_ref[...]
        h2 = jnp.maximum(h2, 0.0)

        # fused heads: one matmul produces [policy logits | value | padding]
        fused = jnp.dot(h2.astype(wh_ref.dtype), wh_ref[...],
                        preferred_element_type=jnp.float32) + bh_ref[...]

        # masked softmax over the first `action_dim` lanes only (kept in f32)
        lane = jax.lax.broadcasted_iota(jnp.int32, fused.shape, dimension=1)
        is_policy = lane < action_dim
        masked_logits = jnp.where(is_policy, fused, jnp.float32(-1e30))
        m = jnp.max(masked_logits, axis=-1, keepdims=True)
        e = jnp.exp(masked_logits - m)                 # padded lanes -> exp(-big) = 0
        denom = jnp.sum(e, axis=-1, keepdims=True)
        probs = e * pl.reciprocal(denom, approx=True)  # EUP vrcp, otherwise idle

        # one lane-dense (multiple-of-128) store:
        # policy lanes = softmax, value/pad lanes = raw fused
        out_ref[...] = jnp.where(is_policy, probs, fused).astype(out_ref.dtype)

    return kernel


# --------------------------- one-time param prep --------------------------- #
def prepare_params(params):
    """Pad, fuse heads and cast to the MXU dtype ONCE (not per forward call)."""
    in_dim, hidden = params["w1"].shape
    action_dim = params["wp"].shape[1]
    pred_dim = params["wv"].shape[1]

    in_pad = _round_up(in_dim, 128)
    hid_pad = _round_up(hidden, 128)
    head_pad = _round_up(action_dim + pred_dim, 128)

    def pad2(a, rows, cols):
        return jnp.pad(a, ((0, rows - a.shape[0]), (0, cols - a.shape[1])))

    prepped = {
        # MXU operands (bf16): halves weight DMA + VMEM residency
        "w1": pad2(params["w1"], in_pad, hid_pad).astype(MXU_DTYPE),
        "w2": pad2(params["w2"], hid_pad, hid_pad).astype(MXU_DTYPE),
        "wh": pad2(jnp.concatenate([params["wp"], params["wv"]], axis=1),
                   hid_pad, head_pad).astype(MXU_DTYPE),
        # VPU operands stay f32 (v5e has no bf16 VALU/EUP)
        "b1": pad2(params["b1"], 1, hid_pad).astype(jnp.float32),
        "b2": pad2(params["b2"], 1, hid_pad).astype(jnp.float32),
        "bh": pad2(jnp.concatenate([params["bp"], params["bv"]], axis=1),
                   1, head_pad).astype(jnp.float32),
    }
    meta = dict(in_dim=in_dim, hidden=hidden, action_dim=action_dim,
                pred_dim=pred_dim, in_pad=in_pad, hid_pad=hid_pad,
                head_pad=head_pad)
    return prepped, meta


# ------------------------------ JAX wrapper -------------------------------- #
def modular_forward(x, prepped, meta, *, batch_tile=512):
    batch, in_dim = x.shape
    assert in_dim == meta["in_dim"]
    in_pad, hid_pad, head_pad = meta["in_pad"], meta["hid_pad"], meta["head_pad"]
    action_dim, pred_dim = meta["action_dim"], meta["pred_dim"]

    # batch tiling: big tiles (MXU occupancy, amortize ~0.35us/step), but
    # guarantee >= 2 grid steps on large batches so v7x's 2nd TC gets work.
    b_pad = _round_up(batch, 8)
    tb = min(batch_tile, b_pad)
    if b_pad // tb < 2 and b_pad >= 256:
        tb = _round_up(b_pad // 2, 8)
    b_pad = _round_up(b_pad, tb)
    grid = (b_pad // tb,)

    xp = jnp.pad(x, ((0, b_pad - batch), (0, in_pad - in_dim))).astype(MXU_DTYPE)

    # explicit VMEM budget: resident weights + double-buffered x/out tiles
    weight_bytes = sum(int(v.size) * v.dtype.itemsize for v in prepped.values())
    io_bytes = 2 * tb * in_pad * MXU_DTYPE.dtype.itemsize + 2 * tb * head_pad * 4
    vmem_limit = min(max(2 * (weight_bytes + io_bytes) + (4 << 20), 16 << 20), 48 << 20)

    # whole-array, single-buffered, VMEM-resident weights (no pointless
    # double-buffering of constants)
    whole_vmem = pl.BlockSpec(memory_space=pltpu.MemorySpace.VMEM)

    out = pl.pallas_call(
        make_modular_kernel(action_dim),
        grid=grid,
        in_specs=[
            pl.BlockSpec((tb, in_pad), lambda i: (i, 0)),   # x: pipelined over batch
            whole_vmem,  # w1
            whole_vmem,  # b1
            whole_vmem,  # w2
            whole_vmem,  # b2
            whole_vmem,  # wh (= [wp | wv] fused)
            whole_vmem,  # bh
        ],
        out_specs=pl.BlockSpec((tb, head_pad), lambda i: (i, 0)),
        out_shape=jax.ShapeDtypeStruct((b_pad, head_pad), jnp.float32),
        compiler_params=pltpu.CompilerParams(
            dimension_semantics=("parallel",),   # shard batch tiles across TCs
            vmem_limit_bytes=int(vmem_limit),
        ),
    )(xp, prepped["w1"], prepped["b1"], prepped["w2"], prepped["b2"],
      prepped["wh"], prepped["bh"])

    policy = out[:batch, :action_dim]
    value = out[:batch, action_dim:action_dim + pred_dim]
    return policy, value


# ------------------------------- reference --------------------------------- #
def reference_forward(x, p):
    h1 = jnp.maximum(x @ p["w1"] + p["b1"], 0.0)
    h2 = jnp.maximum(h1 @ p["w2"] + p["b2"], 0.0)
    logits = h2 @ p["wp"] + p["bp"]
    policy = jax.nn.softmax(logits, axis=-1)
    value = h2 @ p["wv"] + p["bv"]
    return policy, value


def init_params(key, in_dim, hidden, action_dim, pred_dim, dtype=jnp.float32):
    ks = jax.random.split(key, 8)
    scale = 0.1
    return {
        "w1": scale * jax.random.normal(ks[0], (in_dim, hidden), dtype),
        "b1": scale * jax.random.normal(ks[1], (1, hidden), dtype),
        "w2": scale * jax.random.normal(ks[2], (hidden, hidden), dtype),
        "b2": scale * jax.random.normal(ks[3], (1, hidden), dtype),
        "wp": scale * jax.random.normal(ks[4], (hidden, action_dim), dtype),
        "bp": scale * jax.random.normal(ks[5], (1, action_dim), dtype),
        "wv": scale * jax.random.normal(ks[6], (hidden, pred_dim), dtype),
        "bv": scale * jax.random.normal(ks[7], (1, pred_dim), dtype),
    }


if __name__ == "__main__":
    key = jax.random.PRNGKey(0)
    k_x, k_p = jax.random.split(key)

    # batch many (env-step) states per call instead of per-state forwards
    batch, in_dim, hidden, action_dim, pred_dim = 64, 32, 64, 16, 1
    x = jax.random.normal(k_x, (batch, in_dim), jnp.float32)
    params = init_params(k_p, in_dim, hidden, action_dim, pred_dim)

    # one-time prep (pad, fuse heads, bf16 cast) — reused across calls
    prepped, meta = prepare_params(params)
    jax.block_until_ready(prepped)

    policy, value = modular_forward(x, prepped, meta)
    jax.block_until_ready((policy, value))

    ref_policy, ref_value = reference_forward(x, params)
    # bf16 MXU operands + approximate (EUP) reciprocal -> loose tolerances
    assert jnp.allclose(policy, ref_policy, atol=1e-2, rtol=1e-2)
    assert jnp.allclose(jnp.sum(policy, axis=-1), 1.0, atol=5e-3)
    assert jnp.allclose(value, ref_value, atol=2e-2, rtol=2e-2)

    print("KERNEL_OK")
</pallas_src>

<mosaic_0001>
module attributes {stable_mosaic.version = 11 : i64} {
  func.func @kernel(%arg0: i32, %arg1: memref<64x128xbf16, #tpu.memory_space<vmem>>, %arg2: memref<128x128xbf16, #tpu.memory_space<vmem>>, %arg3: memref<1x128xf32, #tpu.memory_space<vmem>>, %arg4: memref<128x128xbf16, #tpu.memory_space<vmem>>, %arg5: memref<1x128xf32, #tpu.memory_space<vmem>>, %arg6: memref<128x128xbf16, #tpu.memory_space<vmem>>, %arg7: memref<1x128xf32, #tpu.memory_space<vmem>>, %arg8: memref<64x128xf32, #tpu.memory_space<vmem>>) attributes {dimension_semantics = [#tpu.dimension_semantics<parallel>], iteration_bounds = array<i64: 1>, scalar_prefetch = 0 : i64, scratch_operands = 0 : i64, tpu.core_type = #tpu.core_type<tc>, window_params = [{transform_indices = @transform_0, window_bounds = array<i64: 64, 128>}, {pipeline_mode = #tpu.pipeline_mode<synchronous>, transform_indices = @transform_1, window_bounds = array<i64: 128, 128>}, {pipeline_mode = #tpu.pipeline_mode<synchronous>, transform_indices = @transform_2, window_bounds = array<i64: 1, 128>}, {pipeline_mode = #tpu.pipeline_mode<synchronous>, transform_indices = @transform_3, window_bounds = array<i64: 128, 128>}, {pipeline_mode = #tpu.pipeline_mode<synchronous>, transform_indices = @transform_4, window_bounds = array<i64: 1, 128>}, {pipeline_mode = #tpu.pipeline_mode<synchronous>, transform_indices = @transform_5, window_bounds = array<i64: 128, 128>}, {pipeline_mode = #tpu.pipeline_mode<synchronous>, transform_indices = @transform_6, window_bounds = array<i64: 1, 128>}, {transform_indices = @transform_7, window_bounds = array<i64: 64, 128>}]} {
    %c0 = arith.constant 0 : index
    %c0_0 = arith.constant 0 : index
    %0 = vector.load %arg1[%c0, %c0_0] : memref<64x128xbf16, #tpu.memory_space<vmem>>, vector<64x128xbf16>
    %c0_1 = arith.constant 0 : index
    %c0_2 = arith.constant 0 : index
    %1 = vector.load %arg2[%c0_1, %c0_2] : memref<128x128xbf16, #tpu.memory_space<vmem>>, vector<128x128xbf16>
    %cst = arith.constant dense<0.000000e+00> : vector<64x128xf32>
    %2 = tpu.matmul %0, %1, %cst {dimension_numbers = #tpu.dot_dimension_numbers<[1], [0], [0], [1], [0, 0, 1, 1], [], []>} : vector<64x128xbf16>, vector<128x128xbf16>, vector<64x128xf32> -> vector<64x128xf32>
    %c0_3 = arith.constant 0 : index
    %c0_4 = arith.constant 0 : index
    %3 = vector.load %arg3[%c0_3, %c0_4] : memref<1x128xf32, #tpu.memory_space<vmem>>, vector<1x128xf32>
    %4 = vector.broadcast %3 : vector<1x128xf32> to vector<64x128xf32>
    %5 = arith.addf %2, %4 : vector<64x128xf32>
    %cst_5 = arith.constant 0.000000e+00 : f32
    %6 = vector.broadcast %cst_5 : f32 to vector<64x128xf32>
    %7 = arith.maximumf %5, %6 : vector<64x128xf32>
    %8 = arith.truncf %7 : vector<64x128xf32> to vector<64x128xbf16>
    %c0_6 = arith.constant 0 : index
    %c0_7 = arith.constant 0 : index
    %9 = vector.load %arg4[%c0_6, %c0_7] : memref<128x128xbf16, #tpu.memory_space<vmem>>, vector<128x128xbf16>
    %cst_8 = arith.constant dense<0.000000e+00> : vector<64x128xf32>
    %10 = tpu.matmul %8, %9, %cst_8 {dimension_numbers = #tpu.dot_dimension_numbers<[1], [0], [0], [1], [0, 0, 1, 1], [], []>} : vector<64x128xbf16>, vector<128x128xbf16>, vector<64x128xf32> -> vector<64x128xf32>
    %c0_9 = arith.constant 0 : index
    %c0_10 = arith.constant 0 : index
    %11 = vector.load %arg5[%c0_9, %c0_10] : memref<1x128xf32, #tpu.memory_space<vmem>>, vector<1x128xf32>
    %12 = vector.broadcast %11 : vector<1x128xf32> to vector<64x128xf32>
    %13 = arith.addf %10, %12 : vector<64x128xf32>
    %cst_11 = arith.constant 0.000000e+00 : f32
    %14 = vector.broadcast %cst_11 : f32 to vector<64x128xf32>
    %15 = arith.maximumf %13, %14 : vector<64x128xf32>
    %16 = arith.truncf %15 : vector<64x128xf32> to vector<64x128xbf16>
    %c0_12 = arith.constant 0 : index
    %c0_13 = arith.constant 0 : index
    %17 = vector.load %arg6[%c0_12, %c0_13] : memref<128x128xbf16, #tpu.memory_space<vmem>>, vector<128x128xbf16>
    %cst_14 = arith.constant dense<0.000000e+00> : vector<64x128xf32>
    %18 = tpu.matmul %16, %17, %cst_14 {dimension_numbers = #tpu.dot_dimension_numbers<[1], [0], [0], [1], [0, 0, 1, 1], [], []>} : vector<64x128xbf16>, vector<128x128xbf16>, vector<64x128xf32> -> vector<64x128xf32>
    %c0_15 = arith.constant 0 : index
    %c0_16 = arith.constant 0 : index
    %19 = vector.load %arg7[%c0_15, %c0_16] : memref<1x128xf32, #tpu.memory_space<vmem>>, vector<1x128xf32>
    %20 = vector.broadcast %19 : vector<1x128xf32> to vector<64x128xf32>
    %21 = arith.addf %18, %20 : vector<64x128xf32>
    %22 = tpu.iota {dimensions = array<i32: 1>} : vector<64x128xi32>
    %c16_i32 = arith.constant 16 : i32
    %23 = vector.broadcast %c16_i32 : i32 to vector<64x128xi32>
    %24 = arith.cmpi slt, %22, %23 : vector<64x128xi32>
    %cst_17 = arith.constant -1.000000e+30 : f32
    %25 = vector.broadcast %cst_17 : f32 to vector<64x128xf32>
    %26 = arith.select %24, %21, %25 : vector<64x128xi1>, vector<64x128xf32>
    %cst_18 = arith.constant dense<0xFF800000> : vector<64xf32>
    %27 = vector.multi_reduction <maximumf>, %26, %cst_18 [1] : vector<64x128xf32> to vector<64xf32>
    %28 = vector.shape_cast %27 : vector<64xf32> to vector<64x1xf32>
    %29 = vector.broadcast %28 : vector<64x1xf32> to vector<64x128xf32>
    %30 = arith.subf %26, %29 : vector<64x128xf32>
    %31 = math.exp %30 : vector<64x128xf32>
    %cst_19 = arith.constant dense<0.000000e+00> : vector<64xf32>
    %32 = vector.multi_reduction <add>, %31, %cst_19 [1] : vector<64x128xf32> to vector<64xf32>
    %33 = vector.shape_cast %32 : vector<64xf32> to vector<64x1xf32>
    %34 = tpu.reciprocal %33 {approx = true} : vector<64x1xf32> -> vector<64x1xf32>
    %35 = vector.broadcast %34 : vector<64x1xf32> to vector<64x128xf32>
    %36 = arith.mulf %31, %35 : vector<64x128xf32>
    %37 = arith.select %24, %36, %21 : vector<64x128xi1>, vector<64x128xf32>
    %c0_20 = arith.constant 0 : index
    %c0_21 = arith.constant 0 : index
    %38 = vector.load %arg8[%c0_20, %c0_21] : memref<64x128xf32, #tpu.memory_space<vmem>>, vector<64x128xf32>
    tpu.vector_store %arg8[%c0_20, %c0_21], %37 {strides = array<i32>} : memref<64x128xf32, #tpu.memory_space<vmem>>, vector<64x128xf32>,
    return
  }
  func.func @transform_0(%arg0: i32) -> (i32, i32) {
    %c0_i32 = arith.constant 0 : i32
    %c0_i32_0 = arith.constant 0 : i32
    return %arg0, %c0_i32 : i32, i32
  }
  func.func @transform_1(%arg0: i32) -> (i32, i32) {
    %c0_i32 = arith.constant 0 : i32
    %c0_i32_0 = arith.constant 0 : i32
    %c0_i32_1 = arith.constant 0 : i32
    return %c0_i32, %c0_i32_0 : i32, i32
  }
  func.func @transform_2(%arg0: i32) -> (i32, i32) {
    %c0_i32 = arith.constant 0 : i32
    %c0_i32_0 = arith.constant 0 : i32
    %c0_i32_1 = arith.constant 0 : i32
    return %c0_i32, %c0_i32_0 : i32, i32
  }
  func.func @transform_3(%arg0: i32) -> (i32, i32) {
    %c0_i32 = arith.constant 0 : i32
    %c0_i32_0 = arith.constant 0 : i32
    %c0_i32_1 = arith.constant 0 : i32
    return %c0_i32, %c0_i32_0 : i32, i32
  }
  func.func @transform_4(%arg0: i32) -> (i32, i32) {
    %c0_i32 = arith.constant 0 : i32
    %c0_i32_0 = arith.constant 0 : i32
    %c0_i32_1 = arith.constant 0 : i32
    return %c0_i32, %c0_i32_0 : i32, i32
  }
  func.func @transform_5(%arg0: i32) -> (i32, i32) {
    %c0_i32 = arith.constant 0 : i32
    %c0_i32_0 = arith.constant 0 : i32
    %c0_i32_1 = arith.constant 0 : i32
    return %c0_i32, %c0_i32_0 : i32, i32
  }
  func.func @transform_6(%arg0: i32) -> (i32, i32) {
    %c0_i32 = arith.constant 0 : i32
    %c0_i32_0 = arith.constant 0 : i32
    %c0_i32_1 = arith.constant 0 : i32
    return %c0_i32, %c0_i32_0 : i32, i32
  }
  func.func @transform_7(%arg0: i32) -> (i32, i32) {
    %c0_i32 = arith.constant 0 : i32
    %c0_i32_0 = arith.constant 0 : i32
    return %arg0, %c0_i32 : i32, i32
  }
}

</mosaic_0001>

<bundles_post_ra>
// kernel: tpu_custom_call.1
= control target key start
LH: loop header
LB: loop body
LE: loop exit
PB: predicated region body
PF: predicated region fallthrough
CT: control target
= control target key end

     0   :  { %12 = vsyncpa [#allocation3], 0  ;;  %s1017_s0 = inlined_call_operand.hbm [shape: bf16[64,128], index: 0, kind: input, shape index: {}]   ;;  %s1018_s1 = inlined_call_operand.hbm [shape: bf16[128,128], index: 1, kind: input, shape index: {}]   ;;  %s1019_s2 = inlined_call_operand.vmem [shape: f32[1,128], index: 2, kind: input, shape index: {}]   ;;  %s1020_s3 = inlined_call_operand.hbm [shape: bf16[128,128], index: 3, kind: input, shape index: {}]   ;;  %s1021_s4 = inlined_call_operand.vmem [shape: f32[1,128], index: 4, kind: input, shape index: {}]   ;;  %s1022_s5 = inlined_call_operand.hbm [shape: bf16[128,128], index: 5, kind: input, shape index: {}]   ;;  %s1023_s6 = inlined_call_operand.vmem [shape: f32[1,128], index: 6, kind: input, shape index: {}]   ;;  %s1024_s7 = inlined_call_operand.hbm [shape: f32[64,128], index: 7, kind: output, shape index: {}]  }
   0x1   :  { %13 = vsyncpa [#allocation6], 0 }
   0x2   :  { %14 = vsyncpa [#allocation9], 0 }
   0x3   :  { %15 = vsyncpa [#allocation4], 0  ;;  %s33_s26 = sshll.u32 %s1018_s1, 4  ;;  %s877_s27 = smov [#allocation5]   ;;  %s34_s26 = int_to_ptr.hbm [resolvable:$true] %s33_s26 }
   0x4   :  { %s35_s28 = sshll.u32 %s877_s27, 4  ;;  %s20_s8 = sshll.u32 %s1017_s0, 4  ;;  %s36_s28 = int_to_ptr.vmem [resolvable:$true] %s35_s28  ;;  %s21_s8 = int_to_ptr.hbm [resolvable:$true] %s20_s8 }
   0x5   :  { %s878_s9 = smov 64   ;;  %s879_s10 = smov 4  }
   0x6   :  { %41 = dma.hbm_to_vmem [thread:$0]  %s34_s26, 1024, %s36_s28, [#allocation6], %s878_s9, %s878_s9, %s879_s10  }
   0x7   :  { %s880_s11 = smov [#allocation2]   ;;  %s48_s15 = sshll.u32 %s1020_s3, 4  ;;  %s49_s15 = int_to_ptr.hbm [resolvable:$true] %s48_s15 }
   0x8   :  { %s22_s12 = sshll.u32 %s880_s11, 4  ;;  %s63_s17 = sshll.u32 %s1022_s5, 4  ;;  %s23_s12 = int_to_ptr.vmem [resolvable:$true] %s22_s12  ;;  %s64_s17 = int_to_ptr.hbm [resolvable:$true] %s63_s17 }
   0x9   :  { %28 = dma.hbm_to_vmem [thread:$0]  %s21_s8, 512, %s23_s12, [#allocation3], %s878_s9, %s878_s9, %s879_s10  }
   0xa   :  { %s881_s18 = smov [#allocation7]   ;;  %s882_s0 = smov [#allocation8]  }
   0xb   :  { %s50_s19 = sshll.u32 %s881_s18, 4  ;;  %s65_s20 = sshll.u32 %s882_s0, 4  ;;  %s51_s19 = int_to_ptr.vmem [resolvable:$true] %s50_s19  ;;  %s66_s20 = int_to_ptr.vmem [resolvable:$true] %s65_s20 }
   0xc   :  { %56 = dma.hbm_to_vmem [thread:$0]  %s49_s15, 1024, %s51_s19, [#allocation6], %s878_s9, %s878_s9, %s879_s10  }
   0xd   :  { %71 = dma.hbm_to_vmem [thread:$0]  %s64_s17, 1024, %s66_s20, [#allocation9], %s878_s9, %s878_s9, %s879_s10  }
   0xe   :  { %869 = dma.done.wait [#allocation3], 512  }
   0xf   :  { %870 = vsyncadd [#allocation3], 4294966784 }
  0x10   :  { %871 = dma.done.wait [#allocation6], 2048  }
  0x11   :  { %872 = vsyncadd [#allocation6], 4294965248 }
  0x12   :  { %873 = dma.done.wait [#allocation9], 1024  }
  0x13   :  { %874 = vsyncadd [#allocation9], 4294966272  ;;  %v680_v0 = vld [vmem:[#allocation5 + $0x38] sm:$0xff]  ;;  %v679_v1 = vld [vmem:[#allocation5 + $0x30] sm:$0xff]  ;;  %s542_s26 = sshll.u32 %s1024_s7, 4  ;;  %s884_s27 = smov 128   ;;  %s543_s26 = int_to_ptr.hbm [resolvable:$true] %s542_s26 }
  0x14   :  { %190 = vmatpush.bf16.msra.mxu0 %v680_v0  ;;  %697 = vmatpush.bf16.msra.mxu3 %v680_v0  ;;  %v678_v2 = vld [vmem:[#allocation5 + $0x28] sm:$0xff]  ;;  %v677_v3 = vld [vmem:[#allocation5 + $0x20] sm:$0xff]  ;;  %v676_v4 = vld [vmem:[#allocation5 + $0x18] sm:$0xff]  ;;  %s885_s28 = smov 8  }
  0x15   :  { %v675_v5 = vld [vmem:[#allocation5 + $0x10] sm:$0xff]  ;;  %v674_v6 = vld [vmem:[#allocation5 + $0x8] sm:$0xff]  ;;  %v673_v7 = vld [vmem:[#allocation5] sm:$0xff] }
  0x16   :  { %v669_v8 = vld [vmem:[#allocation2] sm:$0xff]  ;;  %v670_v9 = vld [vmem:[#allocation2 + $0x8] sm:$0xff]  ;;  %v688_v10 = vld [vmem:[#allocation7 + $0x38] sm:$0xff] }
  0x17   :  { %299 = vmatpush.bf16.msra.mxu1 %v688_v10  ;;  %v687_v11 = vld [vmem:[#allocation7 + $0x30] sm:$0xff]  ;;  %v686_v12 = vld [vmem:[#allocation7 + $0x28] sm:$0xff]  ;;  %v685_v13 = vld [vmem:[#allocation7 + $0x20] sm:$0xff] }
  0x18   :  { %191 = vmatpush.bf16.msra.mxu0 %v679_v1  ;;  %698 = vmatpush.bf16.msra.mxu3 %v679_v1  ;;  %v671_v14 = vld [vmem:[#allocation2 + $0x10] sm:$0xff]  ;;  %v672_v15 = vld [vmem:[#allocation2 + $0x18] sm:$0xff]  ;;  %v682_v18 = vld [vmem:[#allocation7 + $0x8] sm:$0xff] }
  0x19   :  { %v684_v16 = vld [vmem:[#allocation7 + $0x18] sm:$0xff]  ;;  %v683_v17 = vld [vmem:[#allocation7 + $0x10] sm:$0xff]  ;;  %v681_v19 = vld [vmem:[#allocation7] sm:$0xff] }
  0x1a   :  { %v714_v21 = vld [vmem:[%s1019_s2] ss:$0 sm:$0xff]  ;;  %v696_v37 = vld [vmem:[#allocation8 + $0x38] sm:$0xff]  ;;  %v695_v38 = vld [vmem:[#allocation8 + $0x30] sm:$0xff] }
  0x1b   :  { %300 = vmatpush.bf16.msra.mxu1 %v687_v11  ;;  %408 = vmatpush.bf16.msra.mxu2 %v696_v37  ;;  %v694_v41 = vld [vmem:[#allocation8 + $0x28] sm:$0xff]  ;;  %v693_v45 = vld [vmem:[#allocation8 + $0x20] sm:$0xff]  ;;  %v692_v53 = vld [vmem:[#allocation8 + $0x18] sm:$0xff] }
  0x1c   :  { %192 = vmatpush.bf16.msra.mxu0 %v678_v2  ;;  %699 = vmatpush.bf16.msra.mxu3 %v678_v2  ;;  %v691_v54 = vld [vmem:[#allocation8 + $0x10] sm:$0xff]  ;;  %v690_v55 = vld [vmem:[#allocation8 + $0x8] sm:$0xff]  ;;  %v689_v56 = vld [vmem:[#allocation8] sm:$0xff] }
  0x1d   :  { %v715_v58 = vld [vmem:[%s1021_s4] ss:$0 sm:$0xff] }
  0x1f   :  { %301 = vmatpush.bf16.msra.mxu1 %v686_v12  ;;  %409 = vmatpush.bf16.msra.mxu2 %v695_v38 }
  0x20   :  { %193 = vmatpush.bf16.msra.mxu0 %v677_v3  ;;  %700 = vmatpush.bf16.msra.mxu3 %v677_v3 }
  0x23   :  { %302 = vmatpush.bf16.msra.mxu1 %v685_v13  ;;  %410 = vmatpush.bf16.msra.mxu2 %v694_v41 }
  0x24   :  { %194 = vmatpush.bf16.msra.mxu0 %v676_v4  ;;  %701 = vmatpush.bf16.msra.mxu3 %v676_v4 }
  0x27   :  { %303 = vmatpush.bf16.msra.mxu1 %v684_v16  ;;  %411 = vmatpush.bf16.msra.mxu2 %v693_v45 }
  0x28   :  { %195 = vmatpush.bf16.msra.mxu0 %v675_v5  ;;  %702 = vmatpush.bf16.msra.mxu3 %v675_v5 }
  0x2b   :  { %304 = vmatpush.bf16.msra.mxu1 %v683_v17  ;;  %412 = vmatpush.bf16.msra.mxu2 %v692_v53 }
  0x2c   :  { %196 = vmatpush.bf16.msra.mxu0 %v674_v6  ;;  %703 = vmatpush.bf16.msra.mxu3 %v674_v6 }
  0x2f   :  { %305 = vmatpush.bf16.msra.mxu1 %v682_v18  ;;  %413 = vmatpush.bf16.msra.mxu2 %v691_v54 }
  0x30   :  { %197 = vmatpush.bf16.msra.mxu0 %v673_v7  ;;  %704 = vmatpush.bf16.msra.mxu3 %v673_v7 }
  0x33   :  { %198 = vmatmul.bf16.vlgmr.msra.gmra.mxu0 %v669_v8  ;;  %203 = vmatmul.bf16.vlgmr.msra.gmra.mxu3 %v670_v9 }
  0x34   :  { %306 = vmatpush.bf16.msra.mxu1 %v681_v19  ;;  %414 = vmatpush.bf16.msra.mxu2 %v690_v55 }
  0x38   :  { %415 = vmatpush.bf16.msra.mxu2 %v689_v56 }
  0x43   :  { %208 = vmatmul.bf16.gmra.mxu3 %v671_v14 }
  0x53   :  { %213 = vmatmul.bf16.gmra.mxu3 %v672_v15 }
  0xb0   :  { %v199_v20 = vpop.f32.mrf.mxu0 }
  0xb1   :  { %v200_v23 = vadd.f32 %v714_v21, %v199_v20 }
  0xb3   :  { %v219_v26 = vmax.f32 %v200_v23, 0.0 }
  0xb6   :  { %v204_v22 = vpop.f32.mrf.mxu3 }
  0xb7   :  { %v205_v30 = vadd.f32 %v714_v21, %v204_v22  ;;  %v437_v22 = vlaneseq }
  0xb8   :  { %v201_v24 = vpop.f32.mrf.mxu0 }
  0xb9   :  { %v202_v25 = vadd.f32 %v714_v21, %v201_v24  ;;  %v221_v33 = vmax.f32 %v205_v30, 0.0  ;;  %v944_v23 = vand.u32 127, %v437_v22  ;;  %v716_v24 = vld [vmem:[%s1023_s6] ss:$0 sm:$0xff]  ;;  %s883_s6 = smov [#allocation10]  }
  0xba   :  { %s540_s23 = sshll.u32 %s883_s6, 4  ;;  %s541_s23 = int_to_ptr.vmem [resolvable:$true] %s540_s23 }
  0xbb   :  { %v220_v27 = vmax.f32 %v202_v25, 0.0  ;;  %vm439_vm0 = vcmp.lt.s32.totalorder %v944_v23, 16 }
  0xbd   :  { %v227_v28 = vpack.c.bf16 %v220_v27, %v219_v26 }
  0xbe   :  { %v206_v29 = vpop.f32.mrf.mxu3 }
  0xbf   :  { %307 = vmatmul.bf16.vlgmr.msra.gmra.mxu1 %v227_v28  ;;  %v207_v31 = vadd.f32 %v714_v21, %v206_v29 }
  0xc1   :  { %v222_v34 = vmax.f32 %v207_v31, 0.0 }
  0xc3   :  { %v228_v35 = vpack.c.bf16 %v222_v34, %v221_v33 }
  0xc6   :  { %v209_v32 = vpop.f32.mrf.mxu3 }
  0xc7   :  { %v210_v39 = vadd.f32 %v714_v21, %v209_v32 }
  0xc9   :  { %v223_v43 = vmax.f32 %v210_v39, 0.0 }
  0xce   :  { %v211_v36 = vpop.f32.mrf.mxu3 }
  0xcf   :  { %312 = vmatmul.bf16.gmra.mxu1 %v228_v35  ;;  %v212_v40 = vadd.f32 %v714_v21, %v211_v36 }
  0xd1   :  { %v224_v44 = vmax.f32 %v212_v40, 0.0 }
  0xd3   :  { %v229_v46 = vpack.c.bf16 %v224_v44, %v223_v43 }
  0xd6   :  { %v214_v42 = vpop.f32.mrf.mxu3 }
  0xd7   :  { %v215_v48 = vadd.f32 %v714_v21, %v214_v42 }
  0xd9   :  { %v225_v50 = vmax.f32 %v215_v48, 0.0 }
  0xde   :  { %v216_v47 = vpop.f32.mrf.mxu3 }
  0xdf   :  { %317 = vmatmul.bf16.gmra.mxu1 %v229_v46  ;;  %v217_v49 = vadd.f32 %v714_v21, %v216_v47 }
  0xe1   :  { %v226_v51 = vmax.f32 %v217_v49, 0.0 }
  0xe3   :  { %v230_v52 = vpack.c.bf16 %v226_v51, %v225_v50 }
  0xef   :  { %322 = vmatmul.bf16.gmra.mxu1 %v230_v52 }
 0x13c   :  { %v308_v57 = vpop.f32.mrf.mxu1 }
 0x13d   :  { %v309_v59 = vadd.f32 %v715_v58, %v308_v57 }
 0x13f   :  { %v328_v62 = vmax.f32 %v309_v59, 0.0 }
 0x144   :  { %v310_v60 = vpop.f32.mrf.mxu1 }
 0x145   :  { %v311_v61 = vadd.f32 %v715_v58, %v310_v60 }
 0x147   :  { %v329_v63 = vmax.f32 %v311_v61, 0.0 }
 0x149   :  { %v336_v0 = vpack.c.bf16 %v329_v63, %v328_v62 }
 0x14b   :  { %416 = vmatmul.bf16.vlgmr.msra.gmra.mxu2 %v336_v0 }
 0x14c   :  { %v313_v1 = vpop.f32.mrf.mxu1 }
 0x14d   :  { %v314_v2 = vadd.f32 %v715_v58, %v313_v1 }
 0x14f   :  { %v330_v5 = vmax.f32 %v314_v2, 0.0 }
 0x154   :  { %v315_v3 = vpop.f32.mrf.mxu1 }
 0x155   :  { %v316_v4 = vadd.f32 %v715_v58, %v315_v3 }
 0x157   :  { %v331_v6 = vmax.f32 %v316_v4, 0.0 }
 0x159   :  { %v337_v7 = vpack.c.bf16 %v331_v6, %v330_v5 }
 0x15b   :  { %421 = vmatmul.bf16.gmra.mxu2 %v337_v7 }
 0x15c   :  { %v318_v8 = vpop.f32.mrf.mxu1 }
 0x15d   :  { %v319_v9 = vadd.f32 %v715_v58, %v318_v8 }
 0x15f   :  { %v332_v12 = vmax.f32 %v319_v9, 0.0 }
 0x164   :  { %v320_v10 = vpop.f32.mrf.mxu1 }
 0x165   :  { %v321_v11 = vadd.f32 %v715_v58, %v320_v10 }
 0x167   :  { %v333_v13 = vmax.f32 %v321_v11, 0.0 }
 0x169   :  { %v338_v14 = vpack.c.bf16 %v333_v13, %v332_v12 }
 0x16b   :  { %426 = vmatmul.bf16.gmra.mxu2 %v338_v14 }
 0x16c   :  { %v323_v15 = vpop.f32.mrf.mxu1 }
 0x16d   :  { %v324_v16 = vadd.f32 %v715_v58, %v323_v15 }
 0x16f   :  { %v334_v19 = vmax.f32 %v324_v16, 0.0 }
 0x174   :  { %v325_v17 = vpop.f32.mrf.mxu1 }
 0x175   :  { %v326_v18 = vadd.f32 %v715_v58, %v325_v17 }
 0x177   :  { %v335_v20 = vmax.f32 %v326_v18, 0.0 }
 0x179   :  { %v339_v21 = vpack.c.bf16 %v335_v20, %v334_v19 }
 0x17b   :  { %431 = vmatmul.bf16.gmra.mxu2 %v339_v21 }
 0x1ce   :  { %v417_v25 = vpop.f32.mrf.mxu2 }
 0x1cf   :  { %v950_v26 = vadd.f32 %v716_v24, %v417_v25 }
 0x1d1   :  { %v440_v27 = vsel %vm439_vm0, %v950_v26, -1e+30 }
 0x1d2   :  { %448 = vmax.xlane.f32.xlu0 %v440_v27 }
 0x1d6   :  { %v419_v28 = vpop.f32.mrf.mxu2 }
 0x1d7   :  { %v955_v29 = vadd.f32 %v716_v24, %v419_v28 }
 0x1d9   :  { %v441_v30 = vsel %vm439_vm0, %v955_v29, -1e+30 }
 0x1da   :  { %450 = vmax.xlane.f32.xlu0 %v441_v30 }
 0x1de   :  { %v422_v31 = vpop.f32.mrf.mxu2 }
 0x1df   :  { %v960_v32 = vadd.f32 %v716_v24, %v422_v31 }
 0x1e1   :  { %v442_v33 = vsel %vm439_vm0, %v960_v32, -1e+30 }
 0x1e2   :  { %452 = vmax.xlane.f32.xlu1 %v442_v33 }
 0x1e6   :  { %v424_v34 = vpop.f32.mrf.mxu2 }
 0x1e7   :  { %v965_v35 = vadd.f32 %v716_v24, %v424_v34 }
 0x1e9   :  { %v443_v36 = vsel %vm439_vm0, %v965_v35, -1e+30 }
 0x1ea   :  { %454 = vmax.xlane.f32.xlu1 %v443_v36 }
 0x1ee   :  { %v427_v37 = vpop.f32.mrf.mxu2 }
 0x1ef   :  { %v970_v38 = vadd.f32 %v716_v24, %v427_v37 }
 0x1f1   :  { %v444_v39 = vsel %vm439_vm0, %v970_v38, -1e+30 }
 0x1f2   :  { %456 = vmax.xlane.f32.xlu2 %v444_v39 }
 0x1f6   :  { %v429_v40 = vpop.f32.mrf.mxu2 }
 0x1f7   :  { %v975_v41 = vadd.f32 %v716_v24, %v429_v40 }
 0x1f9   :  { %v445_v42 = vsel %vm439_vm0, %v975_v41, -1e+30 }
 0x1fa   :  { %458 = vmax.xlane.f32.xlu2 %v445_v42 }
 0x1fe   :  { %v432_v43 = vpop.f32.mrf.mxu2 }
 0x1ff   :  { %v980_v44 = vadd.f32 %v716_v24, %v432_v43 }
 0x201   :  { %v446_v45 = vsel %vm439_vm0, %v980_v44, -1e+30 }
 0x202   :  { %460 = vmax.xlane.f32.xlu0 %v446_v45 }
 0x206   :  { %v434_v46 = vpop.f32.mrf.mxu2 }
 0x207   :  { %v985_v47 = vadd.f32 %v716_v24, %v434_v46 }
 0x209   :  { %v447_v48 = vsel %vm439_vm0, %v985_v47, -1e+30 }
 0x20a   :  { %462 = vmax.xlane.f32.xlu1 %v447_v48 }
 0x245   :  { %v449_v49 = vpop.xlane.xlu0 %448 }
 0x246   :  { %v464_v50 = vsub.f32 %v440_v27, %v449_v49 }
 0x248   :  { %v472_v51 = vmul.f32 1.442695, %v464_v50 }
 0x24a   :  { %717 = vpow2.f32 %v472_v51 }
 0x24d   :  { %v451_v52 = vpop.xlane.xlu0 %450 }
 0x24e   :  { %v465_v53 = vsub.f32 %v441_v30, %v451_v52 }
 0x250   :  { %v718_v54 = vpop.eup %717  ;;  %v474_v55 = vmul.f32 1.442695, %v465_v53 }
 0x251   :  { %488 = vadd.xlane.f32.xlu2 %v718_v54 }
 0x252   :  { %719 = vpow2.f32 %v474_v55 }
 0x255   :  { %v453_v56 = vpop.xlane.xlu1 %452 }
 0x256   :  { %v466_v57 = vsub.f32 %v442_v33, %v453_v56 }
 0x258   :  { %v720_v58 = vpop.eup %719  ;;  %v476_v59 = vmul.f32 1.442695, %v466_v57 }
 0x259   :  { %490 = vadd.xlane.f32.xlu0 %v720_v58 }
 0x25a   :  { %721 = vpow2.f32 %v476_v59 }
 0x25d   :  { %v455_v60 = vpop.xlane.xlu1 %454 }
 0x25e   :  { %v467_v61 = vsub.f32 %v443_v36, %v455_v60 }
 0x260   :  { %v722_v62 = vpop.eup %721  ;;  %v478_v63 = vmul.f32 1.442695, %v467_v61 }
 0x261   :  { %492 = vadd.xlane.f32.xlu1 %v722_v62 }
 0x262   :  { %723 = vpow2.f32 %v478_v63 }
 0x265   :  { %v457_v0 = vpop.xlane.xlu2 %456 }
 0x266   :  { %v468_v1 = vsub.f32 %v444_v39, %v457_v0 }
 0x268   :  { %v724_v2 = vpop.eup %723  ;;  %v480_v3 = vmul.f32 1.442695, %v468_v1 }
 0x269   :  { %494 = vadd.xlane.f32.xlu2 %v724_v2 }
 0x26a   :  { %725 = vpow2.f32 %v480_v3 }
 0x26d   :  { %v459_v4 = vpop.xlane.xlu2 %458 }
 0x26e   :  { %v469_v5 = vsub.f32 %v445_v42, %v459_v4 }
 0x270   :  { %v726_v6 = vpop.eup %725  ;;  %v482_v7 = vmul.f32 1.442695, %v469_v5 }
 0x271   :  { %496 = vadd.xlane.f32.xlu0 %v726_v6 }
 0x272   :  { %727 = vpow2.f32 %v482_v7 }
 0x275   :  { %v461_v8 = vpop.xlane.xlu0 %460 }
 0x276   :  { %v470_v9 = vsub.f32 %v446_v45, %v461_v8 }
 0x278   :  { %v728_v10 = vpop.eup %727  ;;  %v484_v11 = vmul.f32 1.442695, %v470_v9 }
 0x279   :  { %498 = vadd.xlane.f32.xlu1 %v728_v10 }
 0x27a   :  { %729 = vpow2.f32 %v484_v11 }
 0x27d   :  { %v463_v12 = vpop.xlane.xlu1 %462 }
 0x27e   :  { %v471_v13 = vsub.f32 %v447_v48, %v463_v12 }
 0x280   :  { %v730_v14 = vpop.eup %729  ;;  %v486_v15 = vmul.f32 1.442695, %v471_v13 }
 0x281   :  { %500 = vadd.xlane.f32.xlu2 %v730_v14 }
 0x282   :  { %731 = vpow2.f32 %v486_v15 }
 0x288   :  { %v732_v16 = vpop.eup %731 }
 0x289   :  { %502 = vadd.xlane.f32.xlu0 %v732_v16 }
 0x2c4   :  { %v489_v17 = vpop.xlane.xlu2 %488 }
 0x2c5   :  { %733 = vrcp.f32 %v489_v17 }
 0x2cb   :  { %v734_v18 = vpop.eup %733 }
 0x2cc   :  { %v512_v19 = vmul.f32 %v734_v18, %v718_v54  ;;  %v491_v20 = vpop.xlane.xlu0 %490 }
 0x2cd   :  { %735 = vrcp.f32 %v491_v20 }
 0x2ce   :  { %v520_v21 = vsel %vm439_vm0, %v512_v19, %v950_v26 }
 0x2cf   :  { %528 = vst [vmem:[#allocation10] sm:$0xff] %v520_v21 }
 0x2d3   :  { %v736_v22 = vpop.eup %735 }
 0x2d4   :  { %v513_v24 = vmul.f32 %v736_v22, %v720_v58  ;;  %v493_v25 = vpop.xlane.xlu1 %492 }
 0x2d5   :  { %737 = vrcp.f32 %v493_v25 }
 0x2d6   :  { %v521_v27 = vsel %vm439_vm0, %v513_v24, %v955_v29 }
 0x2d7   :  { %529 = vst [vmem:[#allocation10 + $0x8] sm:$0xff] %v521_v27 }
 0x2db   :  { %v738_v28 = vpop.eup %737 }
 0x2dc   :  { %v514_v30 = vmul.f32 %v738_v28, %v722_v62  ;;  %v495_v31 = vpop.xlane.xlu2 %494 }
 0x2dd   :  { %739 = vrcp.f32 %v495_v31 }
 0x2de   :  { %v522_v33 = vsel %vm439_vm0, %v514_v30, %v960_v32 }
 0x2df   :  { %530 = vst [vmem:[#allocation10 + $0x10] sm:$0xff] %v522_v33 }
 0x2e3   :  { %v740_v26 = vpop.eup %739 }
 0x2e4   :  { %v515_v34 = vmul.f32 %v740_v26, %v724_v2  ;;  %v497_v36 = vpop.xlane.xlu0 %496 }
 0x2e5   :  { %741 = vrcp.f32 %v497_v36 }
 0x2e6   :  { %v523_v37 = vsel %vm439_vm0, %v515_v34, %v965_v35 }
 0x2e7   :  { %531 = vst [vmem:[#allocation10 + $0x18] sm:$0xff] %v523_v37 }
 0x2eb   :  { %v742_v29 = vpop.eup %741 }
 0x2ec   :  { %v516_v39 = vmul.f32 %v742_v29, %v726_v6  ;;  %v499_v40 = vpop.xlane.xlu1 %498 }
 0x2ed   :  { %743 = vrcp.f32 %v499_v40 }
 0x2ee   :  { %v524_v42 = vsel %vm439_vm0, %v516_v39, %v970_v38 }
 0x2ef   :  { %532 = vst [vmem:[#allocation10 + $0x20] sm:$0xff] %v524_v42 }
 0x2f3   :  { %v744_v32 = vpop.eup %743 }
 0x2f4   :  { %v517_v43 = vmul.f32 %v744_v32, %v728_v10  ;;  %v501_v45 = vpop.xlane.xlu2 %500 }
 0x2f5   :  { %745 = vrcp.f32 %v501_v45 }
 0x2f6   :  { %v525_v46 = vsel %vm439_vm0, %v517_v43, %v975_v41 }
 0x2f7   :  { %533 = vst [vmem:[#allocation10 + $0x28] sm:$0xff] %v525_v46 }
 0x2fb   :  { %v746_v35 = vpop.eup %745 }
 0x2fc   :  { %v518_v48 = vmul.f32 %v746_v35, %v730_v14  ;;  %v503_v49 = vpop.xlane.xlu0 %502 }
 0x2fd   :  { %747 = vrcp.f32 %v503_v49 }
 0x2fe   :  { %v526_v50 = vsel %vm439_vm0, %v518_v48, %v980_v44 }
 0x2ff   :  { %534 = vst [vmem:[#allocation10 + $0x30] sm:$0xff] %v526_v50 }
 0x303   :  { %v748_v38 = vpop.eup %747 }
 0x304   :  { %v519_v51 = vmul.f32 %v748_v38, %v732_v16 }
 0x306   :  { %v527_v41 = vsel %vm439_vm0, %v519_v51, %v985_v47 }
 0x307   :  { %535 = vst [vmem:[#allocation10 + $0x38] sm:$0xff] %v527_v41 }
 0x308   :  { %548 = dma.vmem_to_hbm [thread:$0]  %s541_s23, 1024, %s543_s26, [#allocation4], %s884_s27, %s884_s27, %s885_s28  }
 0x309   :  { %875 = dma.done.wait [#allocation4], 1024  }
 0x30a   :  { %876 = vsyncadd [#allocation4], 4294966272 }
 0x30b   :  { %553 = vsyncpa [#allocation3], 1 }
 0x30c   :  { %554 = vsyncpa [#allocation6], 1 }
 0x30d   :  { %555 = vsyncpa [#allocation9], 1 }
 0x30e   :  { %556 = vsyncpa [#allocation4], 1 }

</bundles_post_ra>
